<compile_context>
chip_gen: v6e
topology: v6e:2x2x1
jax: 0.10.0
libtpu: 0.0.40
codegen_flags: <defaults>
</compile_context>

<pallas_src>
import functools

import jax
import jax.numpy as jnp
from jax.experimental import pallas as pl
from jax.experimental.pallas import tpu as pltpu


def _moe_stem_kernel(labels_ref,   # SMEM (N,) int32   scalar-prefetched cluster labels
                     x_ref,        # VMEM (1, Hd+2, Wd+2, C)  padded, downsampled image
                     w_ref,        # VMEM (1, 9*C, COUT)      BN-folded im2col weights (this expert)
                     b_ref,        # VMEM (1, 1, COUT)        BN-folded bias (this expert)
                     o_ref,        # VMEM (1, TH, Wd, COUT)   output row tile
                     acc_ref,      # VMEM scratch (TH*Wd, COUT) f32 mixture accumulator
                     *, TH, Wd, C, COUT):
    n = pl.program_id(0)           # batch index
    t = pl.program_id(1)           # row-tile index
    e = pl.program_id(2)           # expert index (innermost reduction axis)

    @pl.when(e == 0)
    def _zero():
        acc_ref[...] = jnp.zeros_like(acc_ref)

    # im2col: concat the 9 shifted (TH, Wd, C) taps along channels -> (TH*Wd, 9*C),
    # then a single MXU matmul against the (9*C, COUT) folded weights.
    r0 = pl.multiple_of(t * TH, TH)
    taps = []
    for dy in range(3):
        for dx in range(3):
            taps.append(x_ref[0, pl.ds(r0 + dy, TH), dx:dx + Wd, :])     # (TH, Wd, C)
    patches = jnp.concatenate(taps, axis=-1).reshape(TH * Wd, 9 * C)

    y = jnp.dot(patches, w_ref[0], preferred_element_type=jnp.float32)   # (TH*Wd, COUT)
    y = jnp.maximum(y + b_ref[0], 0.0)                                   # bias + ReLU

    # MoE mixture weight: 0.8 for the labeled expert, 0.1 for every other expert.
    gate = jnp.where(labels_ref[n] == e, 0.8, 0.1).astype(jnp.float32)
    acc_ref[...] += gate * y

    @pl.when(e == pl.num_programs(2) - 1)
    def _store():
        o_ref[0] = acc_ref[...].reshape(TH, Wd, COUT).astype(o_ref.dtype)


def _choose_row_tile(Hd, Wd, C, COUT, vmem_budget_bytes=24 * 2**20):
    """Largest divisor of Hd (preferring multiples of 8) whose per-tile VMEM
    footprint fits a v7x-safe budget (64 MiB physical, default scoped 32 MiB)."""
    def tile_bytes(th):
        p = th * Wd
        return (2 * th * Wd * COUT * 4      # double-buffered output block
                + p * COUT * 4              # f32 accumulator scratch
                + 2 * p * 9 * C * 4)        # im2col patch matrix + headroom
    divisors = [d for d in range(Hd, 0, -1) if Hd % d == 0]
    for prefer_aligned in (True, False):
        for d in divisors:
            if prefer_aligned and not (d % 8 == 0 or d == Hd):
                continue
            if tile_bytes(d) <= vmem_budget_bytes:
                return d
    return 1


def moe_first_stage_forward(src, bgr, labels, params, *, row_tile=None):
    """BaseMoE_kmeans first stage: downsample+concat, MoE mixture of expert stems.

    src, bgr : (N, 3, H, W) float32 NCHW (same convention as the PyTorch module)
    labels   : (N,) int32 cluster labels (expert weighted 0.8; others 0.1)
    returns  : (N, COUT, H//2, W//2) float32 NCHW mixed feature map
    """
    w, scale, bias = params
    E, kh, kw, C, COUT = w.shape
    N, C3, H, W = src.shape
    assert kh == 3 and kw == 3 and C == 2 * C3
    assert H % 2 == 0 and W % 2 == 0, "bilinear@0.5 == 2x2 mean requires even H, W"
    Hd, Wd = H // 2, W // 2

    # ---- XLA glue: NCHW->NHWC, concat(src,bgr), 0.5 downsample, SAME zero-pad ----
    x = jnp.concatenate([jnp.transpose(src, (0, 2, 3, 1)),
                         jnp.transpose(bgr, (0, 2, 3, 1))], axis=-1)      # (N,H,W,6)
    x_ds = x.reshape(N, Hd, 2, Wd, 2, C).mean(axis=(2, 4))
    x_pad = jnp.pad(x_ds, ((0, 0), (1, 1), (1, 1), (0, 0)))

    # ---- fold BN scale into conv weights; im2col (9*C, COUT) weight layout ----
    w_folded = (w * scale[:, None, None, None, :]).reshape(E, 9 * C, COUT)
    b_folded = bias.reshape(E, 1, COUT)

    # ---- generation-aware row tile + explicit VMEM limit ----
    TH = row_tile if row_tile is not None else _choose_row_tile(Hd, Wd, C, COUT)
    assert Hd % TH == 0, (Hd, TH)
    n_row_tiles = Hd // TH

    vmem_need = (2 * (Hd + 2) * (Wd + 2) * C * 4          # double-buffered input image
                 + 2 * (9 * C * COUT + COUT) * 4          # double-buffered expert params
                 + 2 * TH * Wd * COUT * 4                 # double-buffered output tile
                 + TH * Wd * (COUT + 2 * 9 * C) * 4)      # accumulator + patch matrix
    vmem_limit = int(min(32 * 2**20, max(16 * 2**20, 2 * vmem_need)))

    flops = 2 * N * E * Hd * Wd * (9 * C) * COUT
    bytes_accessed = int((x_pad.size + w_folded.size + b_folded.size) * 4
                         + N * Hd * Wd * COUT * 4)

    kernel = functools.partial(_moe_stem_kernel, TH=TH, Wd=Wd, C=C, COUT=COUT)
    out_nhwc = pl.pallas_call(
        kernel,
        out_shape=jax.ShapeDtypeStruct((N, Hd, Wd, COUT), jnp.float32),
        grid_spec=pltpu.PrefetchScalarGridSpec(
            num_scalar_prefetch=1,                         # labels -> SMEM
            grid=(N, n_row_tiles, E),
            in_specs=[
                # whole padded image per sample; block index independent of (t, e)
                # so it stays resident across row tiles and experts (one DMA per n).
                pl.BlockSpec((1, Hd + 2, Wd + 2, C), lambda n, t, e, lbl: (n, 0, 0, 0)),
                pl.BlockSpec((1, 9 * C, COUT), lambda n, t, e, lbl: (e, 0, 0)),
                pl.BlockSpec((1, 1, COUT), lambda n, t, e, lbl: (e, 0, 0)),
            ],
            out_specs=pl.BlockSpec((1, TH, Wd, COUT), lambda n, t, e, lbl: (n, t, 0, 0)),
            scratch_shapes=[pltpu.VMEM((TH * Wd, COUT), jnp.float32)],
        ),
        compiler_params=pltpu.CompilerParams(
            dimension_semantics=("parallel", "parallel", "arbitrary"),
            vmem_limit_bytes=vmem_limit),
        cost_estimate=pl.CostEstimate(flops=flops, transcendentals=0,
                                      bytes_accessed=bytes_accessed),
    )(labels, x_pad, w_folded, b_folded)

    return jnp.transpose(out_nhwc, (0, 3, 1, 2))           # NHWC -> NCHW


def init_params(num_experts=4, cin=6, cout=32, key=None):
    """Deterministic synthetic per-expert stem parameters (no checkpoint loading)."""
    key = jax.random.PRNGKey(42) if key is None else key
    kw, kg, kb = jax.random.split(key, 3)
    w = 0.1 * jax.random.normal(kw, (num_experts, 3, 3, cin, cout), jnp.float32)  # HWIO
    gamma = 1.0 + 0.1 * jax.random.normal(kg, (num_experts, cout), jnp.float32)
    beta = 0.1 * jax.random.normal(kb, (num_experts, cout), jnp.float32)
    # Fold BatchNorm (running_mean=0, running_var=1, eps=1e-5) into scale/bias.
    scale = gamma / jnp.sqrt(1.0 + 1e-5)
    bias = beta
    return w, scale, bias


def _reference(src, bgr, labels, params):
    """Pure-JAX reference of the same downsample + MoE-mixture-of-stems computation."""
    w, scale, bias = params
    E, _, _, C, COUT = w.shape
    N, _, H, W = src.shape
    x = jnp.concatenate([jnp.transpose(src, (0, 2, 3, 1)),
                         jnp.transpose(bgr, (0, 2, 3, 1))], axis=-1)
    Hd, Wd = H // 2, W // 2
    x_ds = x.reshape(N, Hd, 2, Wd, 2, C).mean(axis=(2, 4))
    out = jnp.zeros((N, Hd, Wd, COUT), jnp.float32)
    for e in range(E):
        y = jax.lax.conv_general_dilated(
            x_ds, w[e], window_strides=(1, 1), padding="SAME",
            dimension_numbers=("NHWC", "HWIO", "NHWC"))
        y = jnp.maximum(y * scale[e] + bias[e], 0.0)
        gate = jnp.where(labels == e, 0.8, 0.1).astype(jnp.float32)      # (N,)
        out = out + gate[:, None, None, None] * y
    return jnp.transpose(out, (0, 3, 1, 2))


if __name__ == "__main__":
    key = jax.random.PRNGKey(0)
    k_src, k_bgr = jax.random.split(key)
    N, H, W = 2, 16, 16
    num_experts, cout = 4, 32

    src = jax.random.normal(k_src, (N, 3, H, W), jnp.float32)            # NCHW like torch
    bgr = jax.random.normal(k_bgr, (N, 3, H, W), jnp.float32)
    labels = jnp.array([1, 3], dtype=jnp.int32)    # stand-in for the CSV cluster lookup
    params = init_params(num_experts=num_experts, cin=6, cout=cout)

    # row_tile=4 -> 2 row tiles per image so the halo / accumulator logic is exercised.
    out = moe_first_stage_forward(src, bgr, labels, params, row_tile=4)
    out = jax.block_until_ready(out)

    ref = _reference(src, bgr, labels, params)
    assert out.shape == (N, cout, H // 2, W // 2), out.shape
    assert jnp.allclose(out, ref, rtol=1e-4, atol=1e-4), \
        float(jnp.max(jnp.abs(out - ref)))

    print("KERNEL_OK")
</pallas_src>

<mosaic_0001>
module attributes {stable_mosaic.version = 11 : i64} {
  func.func @_moe_stem_kernel(%arg0: i32, %arg1: i32, %arg2: i32, %arg3: memref<2xi32, #tpu.memory_space<smem>>, %arg4: memref<1x10x10x6xf32, #tpu.memory_space<vmem>>, %arg5: memref<1x54x32xf32, #tpu.memory_space<vmem>>, %arg6: memref<1x1x32xf32, #tpu.memory_space<vmem>>, %arg7: memref<1x4x8x32xf32, #tpu.memory_space<vmem>>, %arg8: memref<32x32xf32, #tpu.memory_space<vmem>>) attributes {dimension_semantics = [#tpu.dimension_semantics<parallel>, #tpu.dimension_semantics<parallel>, #tpu.dimension_semantics<arbitrary>], iteration_bounds = array<i64: 2, 2, 4>, scalar_prefetch = 1 : i64, scratch_operands = 1 : i64, tpu.core_type = #tpu.core_type<tc>, window_params = [{transform_indices = @transform_0, window_bounds = array<i64: 1, 10, 10, 6>}, {transform_indices = @transform_1, window_bounds = array<i64: 1, 54, 32>}, {transform_indices = @transform_2, window_bounds = array<i64: 1, 1, 32>}, {transform_indices = @transform_3, window_bounds = array<i64: 1, 4, 8, 32>}]} {
    %c0_i32 = arith.constant 0 : i32
    %0 = arith.cmpi eq, %arg2, %c0_i32 : i32
    %1 = arith.extui %0 : i1 to i32
    %c0_i32_0 = arith.constant 0 : i32
    %2 = arith.cmpi ne, %1, %c0_i32_0 : i32
    scf.if %2 {
      %cst_46 = arith.constant 0.000000e+00 : f32
      %64 = vector.broadcast %cst_46 : f32 to vector<32x32xf32>
      %c0_47 = arith.constant 0 : index
      %c0_48 = arith.constant 0 : index
      %65 = vector.load %arg8[%c0_47, %c0_48] : memref<32x32xf32, #tpu.memory_space<vmem>>, vector<32x32xf32>
      tpu.vector_store %arg8[%c0_47, %c0_48], %64 {strides = array<i32>} : memref<32x32xf32, #tpu.memory_space<vmem>>, vector<32x32xf32>,
    } else {
    }
    %c4_i32 = arith.constant 4 : i32
    %3 = arith.muli %arg1, %c4_i32 : i32
    %4 = tpu.assume_multiple %3, 4 : i32
    %c0_i32_1 = arith.constant 0 : i32
    %5 = arith.addi %4, %c0_i32_1 : i32
    %c0 = arith.constant 0 : index
    %6 = arith.index_cast %5 : i32 to index
    %c0_2 = arith.constant 0 : index
    %c0_3 = arith.constant 0 : index
    %7 = vector.load %arg4[%c0, %6, %c0_2, %c0_3] : memref<1x10x10x6xf32, #tpu.memory_space<vmem>>, vector<1x4x8x6xf32>
    %8 = vector.shape_cast %7 : vector<1x4x8x6xf32> to vector<4x8x6xf32>
    %c0_i32_4 = arith.constant 0 : i32
    %9 = arith.addi %4, %c0_i32_4 : i32
    %c0_5 = arith.constant 0 : index
    %10 = arith.index_cast %9 : i32 to index
    %c1 = arith.constant 1 : index
    %c0_6 = arith.constant 0 : index
    %11 = vector.load %arg4[%c0_5, %10, %c1, %c0_6] : memref<1x10x10x6xf32, #tpu.memory_space<vmem>>, vector<1x4x8x6xf32>
    %12 = vector.shape_cast %11 : vector<1x4x8x6xf32> to vector<4x8x6xf32>
    %c0_i32_7 = arith.constant 0 : i32
    %13 = arith.addi %4, %c0_i32_7 : i32
    %c0_8 = arith.constant 0 : index
    %14 = arith.index_cast %13 : i32 to index
    %c2 = arith.constant 2 : index
    %c0_9 = arith.constant 0 : index
    %15 = vector.load %arg4[%c0_8, %14, %c2, %c0_9] : memref<1x10x10x6xf32, #tpu.memory_space<vmem>>, vector<1x4x8x6xf32>
    %16 = vector.shape_cast %15 : vector<1x4x8x6xf32> to vector<4x8x6xf32>
    %c1_i32 = arith.constant 1 : i32
    %17 = arith.addi %4, %c1_i32 : i32
    %c0_10 = arith.constant 0 : index
    %18 = arith.index_cast %17 : i32 to index
    %c0_11 = arith.constant 0 : index
    %c0_12 = arith.constant 0 : index
    %19 = vector.load %arg4[%c0_10, %18, %c0_11, %c0_12] : memref<1x10x10x6xf32, #tpu.memory_space<vmem>>, vector<1x4x8x6xf32>
    %20 = vector.shape_cast %19 : vector<1x4x8x6xf32> to vector<4x8x6xf32>
    %c1_i32_13 = arith.constant 1 : i32
    %21 = arith.addi %4, %c1_i32_13 : i32
    %c0_14 = arith.constant 0 : index
    %22 = arith.index_cast %21 : i32 to index
    %c1_15 = arith.constant 1 : index
    %c0_16 = arith.constant 0 : index
    %23 = vector.load %arg4[%c0_14, %22, %c1_15, %c0_16] : memref<1x10x10x6xf32, #tpu.memory_space<vmem>>, vector<1x4x8x6xf32>
    %24 = vector.shape_cast %23 : vector<1x4x8x6xf32> to vector<4x8x6xf32>
    %c1_i32_17 = arith.constant 1 : i32
    %25 = arith.addi %4, %c1_i32_17 : i32
    %c0_18 = arith.constant 0 : index
    %26 = arith.index_cast %25 : i32 to index
    %c2_19 = arith.constant 2 : index
    %c0_20 = arith.constant 0 : index
    %27 = vector.load %arg4[%c0_18, %26, %c2_19, %c0_20] : memref<1x10x10x6xf32, #tpu.memory_space<vmem>>, vector<1x4x8x6xf32>
    %28 = vector.shape_cast %27 : vector<1x4x8x6xf32> to vector<4x8x6xf32>
    %c2_i32 = arith.constant 2 : i32
    %29 = arith.addi %4, %c2_i32 : i32
    %c0_21 = arith.constant 0 : index
    %30 = arith.index_cast %29 : i32 to index
    %c0_22 = arith.constant 0 : index
    %c0_23 = arith.constant 0 : index
    %31 = vector.load %arg4[%c0_21, %30, %c0_22, %c0_23] : memref<1x10x10x6xf32, #tpu.memory_space<vmem>>, vector<1x4x8x6xf32>
    %32 = vector.shape_cast %31 : vector<1x4x8x6xf32> to vector<4x8x6xf32>
    %c2_i32_24 = arith.constant 2 : i32
    %33 = arith.addi %4, %c2_i32_24 : i32
    %c0_25 = arith.constant 0 : index
    %34 = arith.index_cast %33 : i32 to index
    %c1_26 = arith.constant 1 : index
    %c0_27 = arith.constant 0 : index
    %35 = vector.load %arg4[%c0_25, %34, %c1_26, %c0_27] : memref<1x10x10x6xf32, #tpu.memory_space<vmem>>, vector<1x4x8x6xf32>
    %36 = vector.shape_cast %35 : vector<1x4x8x6xf32> to vector<4x8x6xf32>
    %c2_i32_28 = arith.constant 2 : i32
    %37 = arith.addi %4, %c2_i32_28 : i32
    %c0_29 = arith.constant 0 : index
    %38 = arith.index_cast %37 : i32 to index
    %c2_30 = arith.constant 2 : index
    %c0_31 = arith.constant 0 : index
    %39 = vector.load %arg4[%c0_29, %38, %c2_30, %c0_31] : memref<1x10x10x6xf32, #tpu.memory_space<vmem>>, vector<1x4x8x6xf32>
    %40 = vector.shape_cast %39 : vector<1x4x8x6xf32> to vector<4x8x6xf32>
    %41 = tpu.concatenate %8, %12, %16, %20, %24, %28, %32, %36, %40 in 2 : vector<4x8x6xf32>, vector<4x8x6xf32>, vector<4x8x6xf32>, vector<4x8x6xf32>, vector<4x8x6xf32>, vector<4x8x6xf32>, vector<4x8x6xf32>, vector<4x8x6xf32>, vector<4x8x6xf32> -> vector<4x8x54xf32>
    %42 = vector.shape_cast %41 : vector<4x8x54xf32> to vector<32x54xf32>
    %c0_32 = arith.constant 0 : index
    %c0_33 = arith.constant 0 : index
    %c0_34 = arith.constant 0 : index
    %43 = vector.load %arg5[%c0_32, %c0_33, %c0_34] : memref<1x54x32xf32, #tpu.memory_space<vmem>>, vector<1x54x32xf32>
    %44 = vector.shape_cast %43 : vector<1x54x32xf32> to vector<54x32xf32>
    %cst = arith.constant dense<0.000000e+00> : vector<32x32xf32>
    %45 = tpu.matmul %42, %44, %cst {dimension_numbers = #tpu.dot_dimension_numbers<[1], [0], [0], [1], [0, 0, 1, 1], [], []>} : vector<32x54xf32>, vector<54x32xf32>, vector<32x32xf32> -> vector<32x32xf32>
    %c0_35 = arith.constant 0 : index
    %c0_36 = arith.constant 0 : index
    %c0_37 = arith.constant 0 : index
    %46 = vector.load %arg6[%c0_35, %c0_36, %c0_37] : memref<1x1x32xf32, #tpu.memory_space<vmem>>, vector<1x1x32xf32>
    %47 = vector.shape_cast %46 : vector<1x1x32xf32> to vector<1x32xf32>
    %48 = vector.broadcast %47 : vector<1x32xf32> to vector<32x32xf32>
    %49 = arith.addf %45, %48 : vector<32x32xf32>
    %cst_38 = arith.constant 0.000000e+00 : f32
    %50 = vector.broadcast %cst_38 : f32 to vector<32x32xf32>
    %51 = arith.maximumf %49, %50 : vector<32x32xf32>
    %52 = arith.index_cast %arg0 : i32 to index
    %53 = memref.load %arg3[%52] : memref<2xi32, #tpu.memory_space<smem>>
    %54 = arith.cmpi eq, %53, %arg2 : i32
    %cst_39 = arith.constant 8.000000e-01 : f32
    %cst_40 = arith.constant 1.000000e-01 : f32
    %55 = arith.select %54, %cst_39, %cst_40 : f32
    %c0_41 = arith.constant 0 : index
    %c0_42 = arith.constant 0 : index
    %56 = vector.load %arg8[%c0_41, %c0_42] : memref<32x32xf32, #tpu.memory_space<vmem>>, vector<32x32xf32>
    %57 = vector.broadcast %55 : f32 to vector<32x32xf32>
    %58 = arith.mulf %57, %51 : vector<32x32xf32>
    %59 = arith.addf %56, %58 : vector<32x32xf32>
    %c0_43 = arith.constant 0 : index
    %c0_44 = arith.constant 0 : index
    %60 = vector.load %arg8[%c0_43, %c0_44] : memref<32x32xf32, #tpu.memory_space<vmem>>, vector<32x32xf32>
    tpu.vector_store %arg8[%c0_43, %c0_44], %59 {strides = array<i32>} : memref<32x32xf32, #tpu.memory_space<vmem>>, vector<32x32xf32>,
    %c3_i32 = arith.constant 3 : i32
    %61 = arith.cmpi eq, %arg2, %c3_i32 : i32
    %62 = arith.extui %61 : i1 to i32
    %c0_i32_45 = arith.constant 0 : i32
    %63 = arith.cmpi ne, %62, %c0_i32_45 : i32
    scf.if %63 {
      %c0_46 = arith.constant 0 : index
      %c0_47 = arith.constant 0 : index
      %64 = vector.load %arg8[%c0_46, %c0_47] : memref<32x32xf32, #tpu.memory_space<vmem>>, vector<32x32xf32>
      %65 = vector.shape_cast %64 : vector<32x32xf32> to vector<4x8x32xf32>
      %c0_48 = arith.constant 0 : index
      %c0_49 = arith.constant 0 : index
      %c0_50 = arith.constant 0 : index
      %c0_51 = arith.constant 0 : index
      %66 = vector.load %arg7[%c0_48, %c0_49, %c0_50, %c0_51] : memref<1x4x8x32xf32, #tpu.memory_space<vmem>>, vector<1x4x8x32xf32>
      %67 = vector.shape_cast %66 : vector<1x4x8x32xf32> to vector<4x8x32xf32>
      %68 = vector.shape_cast %65 : vector<4x8x32xf32> to vector<1x4x8x32xf32>
      tpu.vector_store %arg7[%c0_48, %c0_49, %c0_50, %c0_51], %68 {strides = array<i32>} : memref<1x4x8x32xf32, #tpu.memory_space<vmem>>, vector<1x4x8x32xf32>,
    } else {
    }
    return
  }
  func.func @transform_0(%arg0: i32, %arg1: i32, %arg2: i32, %arg3: memref<2xi32, #tpu.memory_space<smem>>) -> (i32, i32, i32, i32) {
    %c0_i32 = arith.constant 0 : i32
    %c0_i32_0 = arith.constant 0 : i32
    %c0_i32_1 = arith.constant 0 : i32
    %c0_i32_2 = arith.constant 0 : i32
    return %arg0, %c0_i32, %c0_i32_0, %c0_i32_1 : i32, i32, i32, i32
  }
  func.func @transform_1(%arg0: i32, %arg1: i32, %arg2: i32, %arg3: memref<2xi32, #tpu.memory_space<smem>>) -> (i32, i32, i32) {
    %c0_i32 = arith.constant 0 : i32
    %c0_i32_0 = arith.constant 0 : i32
    %c0_i32_1 = arith.constant 0 : i32
    return %arg2, %c0_i32, %c0_i32_0 : i32, i32, i32
  }
  func.func @transform_2(%arg0: i32, %arg1: i32, %arg2: i32, %arg3: memref<2xi32, #tpu.memory_space<smem>>) -> (i32, i32, i32) {
    %c0_i32 = arith.constant 0 : i32
    %c0_i32_0 = arith.constant 0 : i32
    %c0_i32_1 = arith.constant 0 : i32
    return %arg2, %c0_i32, %c0_i32_0 : i32, i32, i32
  }
  func.func @transform_3(%arg0: i32, %arg1: i32, %arg2: i32, %arg3: memref<2xi32, #tpu.memory_space<smem>>) -> (i32, i32, i32, i32) {
    %c0_i32 = arith.constant 0 : i32
    %c0_i32_0 = arith.constant 0 : i32
    %c0_i32_1 = arith.constant 0 : i32
    return %arg0, %arg1, %c0_i32, %c0_i32_0 : i32, i32, i32, i32
  }
}

</mosaic_0001>

<bundles_post_ra>
// kernel: tpu_custom_call.1
= control target key start
LH: loop header
LB: loop body
LE: loop exit
PB: predicated region body
PF: predicated region fallthrough
CT: control target
= control target key end

     0   :  { %s1399_s0 = inlined_call_operand.vmem [shape: s32[2], index: 0, kind: input, shape index: {}]   ;;  %s1400_s1 = inlined_call_operand.vmem [shape: f32[2,10,10,6], index: 1, kind: input, shape index: {}]   ;;  %s1401_s2 = inlined_call_operand.vmem [shape: f32[4,54,32], index: 2, kind: input, shape index: {}]   ;;  %s1402_s3 = inlined_call_operand.vmem [shape: f32[4,1,32], index: 3, kind: input, shape index: {}]   ;;  %s1403_s4 = inlined_call_operand.hbm [shape: f32[2,8,8,32], index: 4, kind: output, shape index: {}]  }
   0x1   :  { %s9_s17 = sshll.u32 %s1399_s0, 4  ;;  %s10_s17 = int_to_ptr.vmem [resolvable:$true] %s9_s17 }
   0x2   :  { %s937_s18 = scalar_lea.vmem %s10_s17, 16  ;;  %p942_p1 = scmp.lt.s32.totalorder %s10_s17, %s10_s17 }
   0x3   :  { %p938_p0 = scmp.ne.s32.totalorder %s10_s17, %s937_s18  ;;  %p943_p2 = scmp.lt.s32.totalorder %s937_s18, %s937_s18 }
   0x5   :  { %p944_p3 = por %p943_p2, %p942_p1 }
   0x7   :  { %p945_p4 = pnand %p944_p3, %p938_p0 }
   0x9   :  { %948 = shalt.err (!%p945_p4)  }
   0xa   :  { %s1061_s19 = smov [#allocation4]  }
   0xb   :  { %12 = dma.vmem_to_smem %s10_s17, 16, %s1061_s19, [#allocation3] }
   0xc   :  { %1015 = dma.done.wait [#allocation3], 16 }
   0xd   :  { %1016 = vsyncadd [#allocation3], 4294967280 }
   0xe   :  { %14 = sfence }
   0xf   :  { %15 = vsyncpa [#allocation6], 0 }
  0x10   :  { %17 = vsyncpa [#allocation6 + $0x1], 0  ;;  %s1102_s20 = smov 0   ;;  %s1104_s21 = smov 0  }
  0x11   :  { %s1106_s0 = smov 0   ;;  %s1108_s22 = smov 0  }
  0x12   :  { %s1110_s23 = smov 0   ;;  %s1112_s24 = smov 0  }
  0x13   :  { %s1114_s25 = smov 0   ;;  %s1116_s26 = smov 0  }
  0x14   :  { %s1118_s27 = smov 0   ;;  %s1120_s28 = smov 0  }
  0x15 LB: > { %1408 = sst [smem:[#allocation9_spill]] %s1055_s27  ;;  %s736_s29 = sadd.s32 4294967295, %s1059_s28   ;;  %s1059_s28 = sphi %s1120_s28, %s23_s28   ;;  %s1055_s27 = sphi %s1118_s27, %s1418_s27   ;;  %s1051_s26 = sphi %s1116_s26, %s1425_s26   ;;  %s1047_s25 = sphi %s1114_s25, %s1424_s25   ;;  %s1043_s24 = sphi %s1112_s24, %s1415_s24   ;;  %s1039_s23 = sphi %s1110_s23, %s1423_s23   ;;  %s1035_s22 = sphi %s1108_s22, %s1422_s22   ;;  %s1031_s0 = sphi %s1106_s0, %s1421_s0   ;;  %s1027_s21 = sphi %s1104_s21, %s1420_s21   ;;  %s1023_s20 = sphi %s1102_s20, %s1419_s20  }
  0x16   : > { %s737_s30 = sadd.s32 4294967294, %s1059_s28   ;;  %s35_s5 = sadd.s32 1, %s1047_s25 }
  0x17   : > { %p36_p5 = scmp.ge.s32.totalorder %s35_s5, 4  ;;  %s38_s6 = sadd.s32 1, %s1051_s26 }
  0x18   : > { %s42_s7 = sadd.s32 1, %s1055_s27  ;;  %p139_p6 = scmp.ne.s32.totalorder %s1031_s0, %s1027_s21 }
  0x19   : > { %s1427_s5 = smov (%p36_p5, %s35_s5), 0  ;;  %s1429_s6 = smov (!%p36_p5, %s38_s6), %s1051_s26 }
  0x1a   : > { %1409 = sst [smem:[#allocation10_spill]] %s1427_s5  ;;  %p140_p7 = scmp.eq.s32.totalorder %s736_s29, 15 }
  0x1b   : > { %p145_p8 = scmp.ne.s32.totalorder %s1027_s21, %s1023_s20  ;;  %p40_p9 = scmp.ge.s32.totalorder %s1429_s6, 2 }
  0x1c   : > { %p146_p10 = scmp.eq.s32.totalorder %s737_s30, 15  ;;  %p1164_p11 = por %p140_p7, %p139_p6 }
  0x1d   : > { %s1431_s6 = smov (%p40_p9, %s1429_s6), 0  ;;  %s1433_s7 = smov (!%p40_p9, %s42_s7), %s1055_s27 }
  0x1e   : > { %1411 = sst [smem:[#allocation11_spill]] %s1431_s6  ;;  %p1171_p12 = por %p146_p10, %p145_p8 }
  0x1f   : > { %p740_p13 = scmp.ge.s32.totalorder %s1059_s28, 1  ;;  %p44_p0 = scmp.ge.s32.totalorder %s1433_s7, 2 }
  0x20   : > { %p186_p1 = scmp.lt.s32.totalorder %s1059_s28, 17  ;;  %s125_s10 = ssub.s32 %s1051_s26, %s1431_s6 }
  0x21   : > { %s1435_s7 = smov (%p44_p0, %s1433_s7), 0  ;;  %s129_s13 = sadd.s32 1, %s1031_s0 }
  0x22   : > { %1413 = sst [smem:[#allocation12_spill]] %s1435_s7  ;;  %p187_p2 = pnand %p740_p13, %p186_p1 }
  0x23   : > { %s124_s11 = ssub.s32 %s1055_s27, %s1435_s7  ;;  %s1406_s15 = sand.u32 (!%p187_p2), 1, %s1027_s21  }
  0x24   : > { %s126_s12 = sor.u32 %s125_s10, %s124_s11  ;;  %190 = sbr.rel (%p187_p2) target bundleno = 470 (0x1d6), region = 32 }
  0x25   : > { %p127_p3 = scmp.eq.s32.totalorder %s126_s12, 0  ;;  %p218_p4 = scmp.lt.s32.totalorder (!%p187_p2), %s1043_s24, 1 }
  0x26   : > { %s741_s16 = sshll.u32 (!%p187_p2), %s1406_s15, 5  ;;  %p223_p5 = scmp.lt.s32.totalorder (!%p187_p2), %s1035_s22, 3 }
  0x27   : > { %s1185_s14 = scalar_select %p127_p3, %s1031_s0, %s129_s13  }
  0x28   : > { %s1209_s27 = scalar_lea.vmem (!%p187_p2), [#allocation5], %s741_s16  ;;  %p744_p6 = scmp.ne.s32.totalorder (!%p187_p2), %s1035_s22, 0 }
  0x29   : > { %s219_s17 = scalar_select %p218_p4, %s1043_s24, 1 }
  0x2a   : > { %s1194_s18 = scalar_select %p223_p5, %s1035_s22, 3 }
  0x2b   : > { %s836_s19 = smul.u32 160, %s219_s17 }
  0x2c   : > { %s837_s29 = smul.u32 56, %s1194_s18  ;;  %s230_s11 = scalar_lea.vmem %s1402_s3, %s1194_s18 }
  0x2d   : > { %s222_s7 = scalar_lea.vmem %s1400_s1, %s836_s19  ;;  %235 = sbr.rel (%p744_p6) target bundleno = 53 (0x35), region = 36 }
  0x2e   : > { %s1207_s15 = scalar_lea.vmem %s1401_s2, %s837_s29 }
  0x32   : > { %vm236_vm0 = vcmask 261120   ;;  %v1062_v0 = vmov 0.0  }
  0x33   : > { %237 = vst.msk [vmem:[#allocation2] sm:$0xff] %vm236_vm0, %v1062_v0  ;;  %238 = vst.msk [vmem:[#allocation2 + $0x8] sm:$0xff] %vm236_vm0, %v1062_v0 }
  0x34   : > { %239 = vst.msk [vmem:[#allocation2 + $0x10] sm:$0xff] %vm236_vm0, %v1062_v0  ;;  %240 = vst.msk [vmem:[#allocation2 + $0x18] sm:$0xff] %vm236_vm0, %v1062_v0 }
  0x35 PF: > { %s788_s17 = sshll.u32 %s1039_s23, 6  ;;  %s1063_s5 = smov 6   ;;  %v460_v14 = vld [vmem:[%s1207_s15 + $0x30] sm:$0x3f]  ;;  %vm481_vm1 = vcmask 1045504   ;;  %v459_v16 = vld [vmem:[%s1207_s15 + $0x28] sm:$0xff] }
  0x36   : > { %s1213_s19 = scalar_lea.vmem %s222_s7, %s788_s17  ;;  %s1064_s6 = smov 12   ;;  %802 = vmatprep.subr.msk.mxu0 %vm481_vm1, %v460_v14  ;;  %822 = vmatprep.subr.msk.mxu1 %vm481_vm1, %v460_v14  ;;  %v458_v17 = vld [vmem:[%s1207_s15 + $0x20] sm:$0xff]  ;;  %v457_v18 = vld [vmem:[%s1207_s15 + $0x18] sm:$0xff]  ;;  %v456_v20 = vld [vmem:[%s1207_s15 + $0x10] sm:$0xff]  ;;  %vm414_vm2 = vcmask 48128   ;;  %vm419_vm3 = vcmask 97280  }
  0x37   : > { %v249_v1 = vld [vmem:[%s1213_s19 + $0x11] sm:$0xff]  ;;  %v248_v2 = vld [vmem:[%s1213_s19 + $0x1] sm:$0xff]  ;;  %s1065_s7 = smov 18   ;;  %s1066_s16 = smov 24   ;;  %803 = vmatpush3.msk.msra.mxu0 %vm481_vm1, %v460_v14  ;;  %829 = vmatpush3.msk.msra.mxu1 %vm481_vm1, %v460_v14  ;;  %vm424_vm4 = vcmask 146432   ;;  %vm429_vm5 = vcmask 195584  }
  0x38   : > { %292 = vrot.lane.b32.xlu1 %v249_v1, %s1063_s5  ;;  %290 = vrot.lane.b32.xlu0 %v248_v2, %s1063_s5  ;;  %v1218_v3 = vld [vmem:[%s1213_s19 + $0x31] sm:$0xff]  ;;  %v1221_v4 = vld [vmem:[%s1213_s19 + $0x21] sm:$0xff]  ;;  %s1067_s29 = smov 30   ;;  %s1068_s30 = smov 36   ;;  %vm434_vm6 = vcmask 244736   ;;  %vm439_vm7 = vcmask 293888  }
  0x39   : > { %v1226_v5 = vld [vmem:[%s1213_s19 + $0x22] sm:$0xff]  ;;  %v1231_v7 = vld [vmem:[%s1213_s19 + $0x32] sm:$0xff]  ;;  %804 = vmatprep.subr.mxu0 %v459_v16  ;;  %823 = vmatprep.subr.mxu1 %v459_v16  ;;  %s1069_s10 = smov 42   ;;  %s1070_s12 = smov 48   ;;  %vm444_vm8 = vcmask 343040   ;;  %vm449_vm9 = vcmask 392192  }
  0x3a   : > { %v252_v6 = vld [vmem:[%s1213_s19 + $0x2] sm:$0xff]  ;;  %v253_v8 = vld [vmem:[%s1213_s19 + $0x12] sm:$0xff]  ;;  %805 = vmatpush3.msra.mxu0 %v459_v16  ;;  %830 = vmatpush3.msra.mxu1 %v459_v16  ;;  %vm468_vm10 = vcmask 441344   ;;  %vm590_vm11 = vcmask 261120   ;;  %p781_p8 = scmp.ne.s32.totalorder %s1035_s22, 3 }
  0x3b   : > { %v1236_v9 = vld [vmem:[%s1213_s19 + $0x30] sm:$0xff]  ;;  %v752_v11 = vld [vmem:[%s1213_s19 + $0x40] sm:$0xff]  ;;  %806 = vmatprep.subr.mxu0 %v458_v17  ;;  %824 = vmatprep.subr.mxu1 %v458_v17  ;;  %v455_v21 = vld [vmem:[%s1207_s15 + $0x8] sm:$0xff] }
  0x3c   : > { %296 = vrot.lane.b32.xlu1 %v1218_v3, %s1063_s5  ;;  %294 = vrot.lane.b32.xlu0 %v1221_v4, %s1063_s5  ;;  %v1239_v10 = vld [vmem:[%s1213_s19 + $0x10] sm:$0xff]  ;;  %v1245_v12 = vld [vmem:[%s1213_s19 + $0x20] sm:$0xff] }
  0x3d   : > { %v756_v13 = vld [vmem:[%s1213_s19 + $0x41] sm:$0xff]  ;;  %v766_v19 = vld [vmem:[%s1213_s19 + $0x50] sm:$0xff]  ;;  %807 = vmatpush3.msra.mxu0 %v458_v17  ;;  %831 = vmatpush3.msra.mxu1 %v458_v17 }
  0x3e   : > { %v760_v15 = vld [vmem:[%s1213_s19 + $0x42] sm:$0xff]  ;;  %808 = vmatprep.subr.mxu0 %v457_v18  ;;  %825 = vmatprep.subr.mxu1 %v457_v18  ;;  %v770_v23 = vld [vmem:[%s1213_s19 + $0x51] sm:$0xff] }
  0x3f   : > { %809 = vmatpush3.msra.mxu0 %v457_v18  ;;  %832 = vmatpush3.msra.mxu1 %v457_v18  ;;  %v454_v22 = vld [vmem:[%s1207_s15] sm:$0xff]  ;;  %v774_v24 = vld [vmem:[%s1213_s19 + $0x52] sm:$0xff]  ;;  %s574_s15 = sld [smem:[#allocation4 + %s1043_s24]] }
  0x40   : > { %310 = vrot.lane.b32.xlu1 %v1226_v5, %s1064_s6  ;;  %306 = vrot.lane.b32.xlu0 %v252_v6, %s1064_s6  ;;  %v244_v49 = vld [vmem:[%s1213_s19] sm:$0xff] }
  0x41   : > { %810 = vmatprep.subr.mxu0 %v456_v20  ;;  %826 = vmatprep.subr.mxu1 %v456_v20 }
  0x42   : > { %811 = vmatpush3.msra.mxu0 %v456_v20  ;;  %833 = vmatpush3.msra.mxu1 %v456_v20 }
  0x43   : > { %812 = vmatprep.subr.mxu0 %v455_v21  ;;  %827 = vmatprep.subr.mxu1 %v455_v21 }
  0x44   : > { %312 = vrot.lane.b32.xlu1 %v1231_v7, %s1064_s6  ;;  %308 = vrot.lane.b32.xlu0 %v253_v8, %s1064_s6 }
  0x45   : > { %813 = vmatpush3.msra.mxu0 %v455_v21  ;;  %834 = vmatpush3.msra.mxu1 %v455_v21  ;;  %p575_p7 = scmp.eq.s32.totalorder %s574_s15, %s1035_s22 }
  0x46   : > { %814 = vmatprep.subr.mxu0 %v454_v22  ;;  %828 = vmatprep.subr.mxu1 %v454_v22 }
  0x47   : > { %815 = vmatpush3.msra.mxu0 %v454_v22  ;;  %835 = vmatpush3.msra.mxu1 %v454_v22  ;;  %s576_s19 = scalar_select %p575_p7, 0.8, 0.1 }
  0x48   : > { %326 = vrot.lane.b32.xlu1 %v1236_v9, %s1065_s7  ;;  %322 = vrot.lane.b32.xlu0 %v1239_v10, %s1065_s7 }
  0x4c   : > { %328 = vrot.lane.b32.xlu1 %v752_v11, %s1065_s7  ;;  %324 = vrot.lane.b32.xlu0 %v1245_v12, %s1065_s7 }
  0x50   : > { %342 = vrot.lane.b32.xlu1 %v1218_v3, %s1066_s16  ;;  %338 = vrot.lane.b32.xlu0 %v249_v1, %s1066_s16 }
  0x54   : > { %344 = vrot.lane.b32.xlu1 %v756_v13, %s1066_s16  ;;  %340 = vrot.lane.b32.xlu0 %v1221_v4, %s1066_s16 }
  0x58   : > { %358 = vrot.lane.b32.xlu1 %v1231_v7, %s1067_s29  ;;  %354 = vrot.lane.b32.xlu0 %v253_v8, %s1067_s29 }
  0x5c   : > { %360 = vrot.lane.b32.xlu1 %v760_v15, %s1067_s29  ;;  %356 = vrot.lane.b32.xlu0 %v1226_v5, %s1067_s29 }
  0x60   : > { %374 = vrot.lane.b32.xlu1 %v752_v11, %s1068_s30  ;;  %370 = vrot.lane.b32.xlu0 %v1245_v12, %s1068_s30 }
  0x64   : > { %376 = vrot.lane.b32.xlu1 %v766_v19, %s1068_s30  ;;  %372 = vrot.lane.b32.xlu0 %v1236_v9, %s1068_s30 }
  0x68   : > { %390 = vrot.lane.b32.xlu1 %v756_v13, %s1069_s10  ;;  %386 = vrot.lane.b32.xlu0 %v1221_v4, %s1069_s10 }
  0x6c   : > { %392 = vrot.lane.b32.xlu1 %v770_v23, %s1069_s10  ;;  %388 = vrot.lane.b32.xlu0 %v1218_v3, %s1069_s10 }
  0x70   : > { %406 = vrot.lane.b32.xlu1 %v760_v15, %s1070_s12  ;;  %402 = vrot.lane.b32.xlu0 %v1226_v5, %s1070_s12 }
  0x74   : > { %408 = vrot.lane.b32.xlu1 %v774_v24, %s1070_s12  ;;  %404 = vrot.lane.b32.xlu0 %v1231_v7, %s1070_s12 }
  0xaa   : > { %v293_v25 = vpop.permute.xlu1 %292  ;;  %v291_v26 = vpop.permute.xlu0 %290 }
  0xab   : > { %v415_v52 = vsel %vm414_vm2, %v244_v49, %v291_v26  ;;  %v416_v62 = vsel %vm414_vm2, %v1239_v10, %v293_v25  ;;  %v775_v26 = vld [vmem:[%s230_s11] ss:$0 sm:$0xff] }
  0xae   : > { %v297_v27 = vpop.permute.xlu1 %296  ;;  %v295_v28 = vpop.permute.xlu0 %294 }
  0xaf   : > { %v417_v53 = vsel %vm414_vm2, %v1245_v12, %v295_v28  ;;  %v418_v63 = vsel %vm414_vm2, %v1236_v9, %v297_v27 }
  0xb2   : > { %v311_v29 = vpop.permute.xlu1 %310  ;;  %v307_v30 = vpop.permute.xlu0 %306 }
  0xb3   : > { %v422_v54 = vsel %vm419_vm3, %v417_v53, %v311_v29  ;;  %v420_v55 = vsel %vm419_vm3, %v415_v52, %v307_v30 }
  0xb6   : > { %v313_v31 = vpop.permute.xlu1 %312  ;;  %v309_v32 = vpop.permute.xlu0 %308 }
  0xb7   : > { %v423_v2 = vsel %vm419_vm3, %v418_v63, %v313_v31  ;;  %v421_v3 = vsel %vm419_vm3, %v416_v62, %v309_v32  ;;  %v581_v31 = vstv %s576_s19 }
  0xba   : > { %v327_v33 = vpop.permute.xlu1 %326  ;;  %v323_v34 = vpop.permute.xlu0 %322 }
  0xbb   : > { %v427_v56 = vsel %vm424_vm4, %v422_v54, %v327_v33  ;;  %v425_v57 = vsel %vm424_vm4, %v420_v55, %v323_v34 }
  0xbe   : > { %v329_v35 = vpop.permute.xlu1 %328  ;;  %v325_v36 = vpop.permute.xlu0 %324 }
  0xbf   : > { %v428_v6 = vsel %vm424_vm4, %v423_v2, %v329_v35  ;;  %v426_v7 = vsel %vm424_vm4, %v421_v3, %v325_v36 }
  0xc2   : > { %v343_v37 = vpop.permute.xlu1 %342  ;;  %v339_v38 = vpop.permute.xlu0 %338 }
  0xc3   : > { %v432_v60 = vsel %vm429_vm5, %v427_v56, %v343_v37  ;;  %v430_v61 = vsel %vm429_vm5, %v425_v57, %v339_v38  ;;  %v578_v38 = vld [vmem:[#allocation2 + $0x8] sm:$0xff] }
  0xc6   : > { %v345_v39 = vpop.permute.xlu1 %344  ;;  %v341_v40 = vpop.permute.xlu0 %340 }
  0xc7   : > { %v433_v12 = vsel %vm429_vm5, %v428_v6, %v345_v39  ;;  %v431_v13 = vsel %vm429_vm5, %v426_v7, %v341_v40  ;;  %v580_v39 = vld [vmem:[#allocation2 + $0x18] sm:$0xff] }
  0xca   : > { %v359_v41 = vpop.permute.xlu1 %358  ;;  %v355_v42 = vpop.permute.xlu0 %354 }
  0xcb   : > { %v437_v0 = vsel %vm434_vm6, %v432_v60, %v359_v41  ;;  %v435_v1 = vsel %vm434_vm6, %v430_v61, %v355_v42 }
  0xce   : > { %v361_v43 = vpop.permute.xlu1 %360  ;;  %v357_v44 = vpop.permute.xlu0 %356 }
  0xcf   : > { %v438_v16 = vsel %vm434_vm6, %v433_v12, %v361_v43  ;;  %v436_v17 = vsel %vm434_vm6, %v431_v13, %v357_v44  ;;  %v577_v44 = vld [vmem:[#allocation2] sm:$0xff] }
  0xd2   : > { %v375_v45 = vpop.permute.xlu1 %374  ;;  %v371_v46 = vpop.permute.xlu0 %370 }
  0xd3   : > { %v442_v4 = vsel %vm439_vm7, %v437_v0, %v375_v45  ;;  %v440_v5 = vsel %vm439_vm7, %v435_v1, %v371_v46  ;;  %v579_v45 = vld [vmem:[#allocation2 + $0x10] sm:$0xff] }
  0xd6   : > { %v377_v47 = vpop.permute.xlu1 %376  ;;  %v373_v48 = vpop.permute.xlu0 %372 }
  0xd7   : > { %v443_v18 = vsel %vm439_vm7, %v438_v16, %v377_v47  ;;  %v441_v19 = vsel %vm439_vm7, %v436_v17, %v373_v48 }
  0xda   : > { %v391_v50 = vpop.permute.xlu1 %390  ;;  %v387_v51 = vpop.permute.xlu0 %386 }
  0xdb   : > { %v447_v8 = vsel %vm444_vm8, %v442_v4, %v391_v50  ;;  %v445_v9 = vsel %vm444_vm8, %v440_v5, %v387_v51 }
  0xde   : > { %v393_v58 = vpop.permute.xlu1 %392  ;;  %v389_v59 = vpop.permute.xlu0 %388 }
  0xdf   : > { %v448_v20 = vsel %vm444_vm8, %v443_v18, %v393_v58  ;;  %v446_v21 = vsel %vm444_vm8, %v441_v19, %v389_v59 }
  0xe2   : > { %v407_v10 = vpop.permute.xlu1 %406  ;;  %v403_v11 = vpop.permute.xlu0 %402 }
  0xe3   : > { %v450_v14 = vsel %vm449_vm9, %v445_v9, %v403_v11  ;;  %v452_v15 = vsel %vm449_vm9, %v447_v8, %v407_v10 }
  0xe4   : > { %816 = vmatprep.mubr.msk.f32.mxu0 %vm468_vm10, %v450_v14  ;;  %819 = vmatprep.mubr.msk.f32.mxu1 %vm468_vm10, %v452_v15 }
  0xe6   : > { %v409_v22 = vpop.permute.xlu1 %408  ;;  %v405_v23 = vpop.permute.xlu0 %404 }
  0xe7   : > { %v453_v24 = vsel %vm449_vm9, %v448_v20, %v409_v22  ;;  %v451_v25 = vsel %vm449_vm9, %v446_v21, %v405_v23 }
  0xe8   : > { %817 = vmatmul.mubr.msk.f32.vlgmr.msra.gmra.mxu0 %vm468_vm10, %v451_v25  ;;  %820 = vmatmul.mubr.msk.f32.vlgmr.msra.gmra.mxu1 %vm468_vm10, %v453_v24 }
 0x1a8   : > { %v818_v27 = vpop.f32.mrf.mxu0  ;;  %v821_v28 = vpop.f32.mrf.mxu1 }
 0x1a9   : > { %v557_v29 = vadd.f32 %v818_v27, %v775_v26  ;;  %v567_v30 = vadd.f32 %v821_v28, %v775_v26 }
 0x1aa   : > { %v551_v32 = vpop.f32.mrf.mxu0  ;;  %v561_v33 = vpop.f32.mrf.mxu1 }
 0x1ab   : > { %v571_v34 = vmax.f32 %v557_v29, 0.0  ;;  %v573_v35 = vmax.f32 %v567_v30, 0.0  ;;  %v552_v36 = vadd.f32 %v775_v26, %v551_v32  ;;  %v562_v37 = vadd.f32 %v775_v26, %v561_v33 }
 0x1ad   : > { %v583_v40 = vmul.f32 %v581_v31, %v571_v34  ;;  %v585_v41 = vmul.f32 %v581_v31, %v573_v35  ;;  %v570_v42 = vmax.f32 %v552_v36, 0.0  ;;  %v572_v43 = vmax.f32 %v562_v37, 0.0 }
 0x1af   : > { %v587_v46 = vadd.f32 %v583_v40, %v578_v38  ;;  %v589_v47 = vadd.f32 %v585_v41, %v580_v39  ;;  %v582_v48 = vmul.f32 %v581_v31, %v570_v42  ;;  %v584_v49 = vmul.f32 %v581_v31, %v572_v43  ;;  %598 = sbr.rel (%p781_p8) target bundleno = 444 (0x1bc), region = 40 }
 0x1b1   : > { %592 = vst.msk [vmem:[#allocation2 + $0x8] sm:$0xff] %vm590_vm11, %v587_v46  ;;  %594 = vst.msk [vmem:[#allocation2 + $0x18] sm:$0xff] %vm590_vm11, %v589_v47  ;;  %v586_v50 = vadd.f32 %v582_v48, %v577_v44  ;;  %v588_v51 = vadd.f32 %v584_v49, %v579_v45 }
 0x1b3   : > { %591 = vst.msk [vmem:[#allocation2] sm:$0xff] %vm590_vm11, %v586_v50  ;;  %593 = vst.msk [vmem:[#allocation2 + $0x10] sm:$0xff] %vm590_vm11, %v588_v51 }
 0x1b8   : > { %v600_v53 = vld [vmem:[#allocation2 + $0x8] sm:$0xff]  ;;  %v602_v55 = vld [vmem:[#allocation2 + $0x18] sm:$0xff] }
 0x1b9   : > { %604 = vst.msk [vmem:[%s1209_s27 + $0x8] sm:$0xff] %vm590_vm11, %v600_v53  ;;  %606 = vst.msk [vmem:[%s1209_s27 + $0x18] sm:$0xff] %vm590_vm11, %v602_v55 }
 0x1ba   : > { %v599_v52 = vld [vmem:[#allocation2] sm:$0xff]  ;;  %v601_v54 = vld [vmem:[#allocation2 + $0x10] sm:$0xff] }
 0x1bb   : > { %603 = vst.msk [vmem:[%s1209_s27] sm:$0xff] %vm590_vm11, %v599_v52  ;;  %605 = vst.msk [vmem:[%s1209_s27 + $0x10] sm:$0xff] %vm590_vm11, %v601_v54 }
 0x1bc PF: > { %s783_s22 = sshll.u32 %s1039_s23, 2  ;;  %s784_s18 = sshll.u32 %s1043_s24, 3 }
 0x1bd   : > { %s623_s11 = sshll.u32 %s1209_s27, 4  ;;  %s620_s5 = sadd.s32 %s784_s18, %s783_s22  ;;  %s1333_s11 = int_to_ptr.vmem [resolvable:$true] %s623_s11 }
 0x1be   : > { %s785_s6 = sshll.u32 %s620_s5, 7  ;;  %s1414_s30 = sand.u32 1, %s1027_s21  }
 0x1bf   : > { %s1338_s29 = scalar_lea.hbm %s1403_s4, %s785_s6  ;;  %s1342_s10 = scalar_lea.sflag [#allocation6], %s1414_s30 }
 0x1c0   : > { %s949_s12 = scalar_lea.vmem %s1333_s11, 512  ;;  %s1071_s23 = smov [#allocation5]  }
 0x1c1   : > { %p950_p9 = scmp.ne.s32.totalorder %s1333_s11, %s949_s12  ;;  %s953_s24 = sshll.u32 %s1071_s23, 4  ;;  %s954_s24 = int_to_ptr.vmem [resolvable:$false] %s953_s24 }
 0x1c2   : > { %s955_s27 = scalar_lea.vmem %s954_s24, 1024  ;;  %p956_p0 = scmp.lt.s32.totalorder %s1333_s11, %s954_s24 }
 0x1c3   : > { %p951_p10 = pnand %p950_p9, %p1164_p11  ;;  %p957_p1 = scmp.lt.s32.totalorder %s955_s27, %s949_s12 }
 0x1c5   : > { %p952_p13 = pneg %p951_p10  ;;  %p958_p2 = por %p957_p1, %p956_p0 }
 0x1c7   : > { %p959_p3 = pnand %p958_p2, %p952_p13 }
 0x1c9   : > { %962 = shalt.err (!%p959_p3)
}
 0x1ca   : > { %s963_s15 = scalar_lea.hbm %s1338_s29, 512  ;;  %s967_s19 = scalar_lea.hbm %s1403_s4, 2048 }
 0x1cb   : > { %p964_p4 = scmp.ne.s32.totalorder %s1338_s29, %s963_s15  ;;  %p968_p7 = scmp.lt.s32.totalorder %s1338_s29, %s1403_s4 }
 0x1cc   : > { %p969_p8 = scmp.lt.s32.totalorder %s967_s19, %s963_s15 }
 0x1cd   : > { %p965_p5 = pnand %p964_p4, %p1164_p11 }
 0x1ce   : > { %p970_p9 = por %p969_p8, %p968_p7 }
 0x1cf   : > { %p966_p6 = pneg %p965_p5 }
 0x1d1   : > { %p971_p10 = pnand %p970_p9, %p966_p6 }
 0x1d3   : > { %974 = shalt.err (!%p971_p10)
}
 0x1d4   : > { %s1072_s5 = smov 128   ;;  %s1073_s6 = smov 8  }
 0x1d5   : > { %838 = dma.vmem_to_hbm [thread:$0]  (%p1164_p11), %s1333_s11, 512, %s1338_s29, %s1342_s10, %s1072_s5, %s1072_s5, %s1073_s6  }
 0x1d6 PF: > { %p844_p13 = scmp.ge.s32.totalorder %s1059_s28, 2  ;;  %s638_s7 = sand.u32 1, %s1023_s20  }
 0x1d7   : > { %s639_s16 = scalar_lea.sflag [#allocation6], %s638_s7 }
 0x1d8   : > { %p841_p0 = pnand %p844_p13, %p1171_p12 }
 0x1da   : > { %p842_p1 = pneg %p841_p0 }
 0x1dc   : > { %1018 = dma.done.wait (%p842_p1), %s639_s16, 512  }
 0x1dd   : > { %1020 = vsyncadd (%p842_p1), %s639_s16, 4294966784  ;;  %s23_s28 = sadd.s32 1, %s1059_s28   ;;  %s1415_s24 = sld [smem:[#allocation9_spill]] }
 0x1de   : > { %p20_p2 = scmp.ge.s32.totalorder %s23_s28, 18   ;;  %s1416_s8 = sld [smem:[#allocation10_spill]] }
 0x1df   : > { %s1417_s11 = sld [smem:[#allocation11_spill]]  ;;  %s1419_s20 = smov %s1027_s21 }
 0x1e0   : > { %s1418_s27 = sld [smem:[#allocation12_spill]]  ;;  %s1420_s21 = smov %s1031_s0 }
 0x1e1   : > { %s1421_s0 = smov %s1185_s14  ;;  %s1422_s22 = smov %s1047_s25 }
 0x1e2   : > { %s1423_s23 = smov %s1051_s26  ;;  %22 = sbr.rel (!%p20_p2) target bundleno = 21 (0x15), region = 84 }
 0x1e4   : > { %s1424_s25 = smov %s1416_s8 }
 0x1e5   : > { %s1425_s26 = smov %s1417_s11 }
 0x1e7   :  { %644 = vsyncpa [#allocation6], 1 }
 0x1e8   :  { %646 = vsyncpa [#allocation6 + $0x1], 1 }

</bundles_post_ra>
